<compile_context>
chip_gen: v5e
topology: v5e:2x2
jax: 0.10.0
libtpu: 0.0.40
codegen_flags: <defaults>
</compile_context>

<pallas_src>
import functools

import jax
import jax.numpy as jnp
from jax import lax
from jax.experimental import pallas as pl
from jax.experimental.pallas import tpu as pltpu


def _round_up(a, m):
    return -(-a // m) * m


def _vmem_budget_bytes():
    """Per-grid-step working-set budget (buffer aware), generation aware."""
    phys = 64 << 20  # assume the smallest per-core VMEM (v7x) when unknown
    try:
        phys = int(pltpu.get_tpu_info().vmem_capacity_bytes)
    except Exception:
        pass
    # leave slack for compiler-internal scratch and pipelining depth
    return max(12 << 20, min(phys // 3, 40 << 20))


def _pick_tb(B, S, C_in, C_out, T, K, stride, padding, dilation,
             nf, RB, CD, Fseg, itemsize, budget):
    """Largest batch tile whose buffer-aware VMEM footprint fits the budget."""
    def est(tb):
        lout = _round_up(tb * Fseg, 128)
        lin = _round_up((lout - 1) * stride + (K - 1) * dilation + 1, 128)
        b_in = _round_up(S * C_in, 8) * _round_up(tb * T, 128) * itemsize * 2
        b_out = _round_up(S * C_out, 8) * lout * itemsize * 2
        b_w = nf * _round_up(RB, 8) * _round_up(CD, 128) * itemsize * 2
        b_xp = _round_up(S * C_in, 8) * lin * itemsize
        b_rhs = _round_up(CD, 8) * lout * itemsize if K > 1 else 0
        return b_in + b_out + b_w + b_xp + b_rhs

    # keep >= 2 grid steps whenever B >= 2 so v7x's two TensorCores both work
    cap = min(max(1, B // 2), 32)
    tb = 1
    for d in range(1, cap + 1):
        if B % d == 0 and est(d) <= budget:
            tb = d
    return tb, est(tb)


def _conv1d_static_kernel(xf_ref, w_ref, o_ref, xp_ref, *im2col_scratch,
                          K, stride, padding, dilation, T, Tseg, TB, FB, cig,
                          lchunk):
    """One batch tile of the grouped per-instrument 1-D conv.

    xf_ref : (1, S*C_in, TB*T)        lane-flattened input tile
    w_ref  : (nf, FB*cog, FB*K*cig)   block-diagonal folded weights
    o_ref  : (1, S*C_out, Lout_pad)   lane-dense output (tail lanes dropped)
    xp_ref : (S*C_in, Lin_pad)        VMEM scratch: zero-halo'd flat time axis
    im2col_scratch[0] (opt): (FB*K*cig, Lout_pad) im2col RHS scratch (K > 1)
    """
    SC_in = xp_ref.shape[0]
    Lout_pad = o_ref.shape[2]
    nf, RB, CD = w_ref.shape
    rhs_ref = im2col_scratch[0] if im2col_scratch else None

    # ---- 1) per-sample zero halo + data, all rows at once (no full zeroing,
    #         no wrapper-side pad of x; megacore-safe: no persistent state) ----
    halo = (jnp.zeros((SC_in, padding), dtype=xp_ref.dtype)
            if padding > 0 else None)

    def _fill_one(b, dynamic):
        seg = b * Tseg
        src = b * T
        if dynamic and (T % 128 == 0):
            src = pl.multiple_of(src, 128)
        if padding > 0:
            xp_ref[:, pl.ds(seg, padding)] = halo
            xp_ref[:, pl.ds(seg + padding + T, padding)] = halo
        xp_ref[:, pl.ds(seg + padding, T)] = xf_ref[0, :, pl.ds(src, T)]

    if TB == 1:
        _fill_one(0, dynamic=False)          # fully static offsets
    else:
        def _fill_body(b, carry):
            _fill_one(b, dynamic=True)
            return carry
        lax.fori_loop(0, TB, _fill_body, 0, unroll=True)

    # ---- 2) one fat matmul per (fused conv bundle, lane chunk) --------------
    n_chunks = Lout_pad // lchunk
    for f in range(nf):
        if K > 1:
            # im2col: stack the K shifted/strided tap views of each conv in
            # this bundle along the contraction axis, once per grid step.
            for j in range(FB):
                src_row = (f * FB + j) * cig
                for k in range(K):
                    dst_row = (j * K + k) * cig
                    start = k * dilation
                    if stride == 1:
                        rhs_ref[dst_row:dst_row + cig, :] = \
                            xp_ref[src_row:src_row + cig,
                                   start:start + Lout_pad]
                    else:
                        rhs_ref[dst_row:dst_row + cig, :] = \
                            xp_ref[src_row:src_row + cig,
                                   pl.ds(start, Lout_pad, stride=stride)]

        wf = w_ref[f]                         # (FB*cog, FB*K*cig)
        for c in range(n_chunks):
            l0 = c * lchunk
            if K > 1:
                rhs = rhs_ref[:, l0:l0 + lchunk]
            else:
                # pointwise conv: contraction rows already contiguous in xp.
                r0 = f * CD
                if stride == 1:
                    rhs = xp_ref[r0:r0 + CD, l0:l0 + lchunk]
                else:
                    rhs = xp_ref[r0:r0 + CD,
                                 pl.ds(l0 * stride, lchunk, stride=stride)]
            res = jnp.dot(wf, rhs, preferred_element_type=jnp.float32)
            o_ref[0, f * RB:(f + 1) * RB, l0:l0 + lchunk] = res.astype(o_ref.dtype)


def conv1d_static(x, w, *, stride=1, padding=0, dilation=1, groups=1, n_src=4):
    """Forward of Conv1dStatic.

    x: (B, n_src, C_in, T)
    w: (n_src*C_out, C_in//groups, K)   nn.Conv1d weight with groups=4*groups
    returns (B, n_src, C_out, T_out)
    """
    B, S, C_in, T = x.shape
    assert S == n_src, (S, n_src)
    C_out_total, cig_w, K = w.shape
    assert C_out_total % n_src == 0
    C_out = C_out_total // n_src
    assert C_in % groups == 0 and C_out % groups == 0
    cig = C_in // groups
    cog = C_out // groups
    assert cig_w == cig, (cig_w, cig)
    # TODO(synk): bias=True variant not implemented (module default is bias=False).

    T_pad = T + 2 * padding
    T_out = (T_pad - dilation * (K - 1) - 1) // stride + 1
    assert T_out >= 1

    # Per-sample lane-segment lengths for the flattened (batch, time) axis.
    Fseg = -(-T_pad // stride)            # output lanes / sample (>= T_out)
    Tseg = Fseg * stride                  # input  lanes / sample (>= T_pad)

    # Fuse as many of the S*groups independent convs as fit one MXU contraction
    # (block-diagonal weight): FB convs of depth K*cig each, FB*K*cig <= 256.
    SG = S * groups
    FOLD_MAX = 256
    FB = 1
    for d in range(1, SG + 1):
        if SG % d == 0 and d * K * cig <= FOLD_MAX:
            FB = d
    nf = SG // FB
    RB = FB * cog                         # output rows per fused matmul
    CD = FB * K * cig                     # contraction depth per fused matmul

    itemsize = jnp.dtype(x.dtype).itemsize
    budget = _vmem_budget_bytes()
    TB, est_bytes = _pick_tb(B, S, C_in, C_out, T, K, stride, padding, dilation,
                             nf, RB, CD, Fseg, itemsize, budget)
    NB = B // TB

    Lout = TB * Fseg
    Lout_pad = _round_up(Lout, 128)       # lane-dense output axis
    Lin = (Lout_pad - 1) * stride + (K - 1) * dilation + 1
    Lin_pad = _round_up(Lin, 128)

    # Lane chunk so the f32 matmul operand+result stay ~<= half the vreg file.
    rows_live = CD + RB
    cap_lanes = max(128, ((256 * 1024) // max(rows_live * 4, 1)) // 128 * 128)
    nblk = Lout_pad // 128
    lchunk = 128
    for d in range(1, nblk + 1):
        if nblk % d == 0 and d * 128 <= cap_lanes:
            lchunk = d * 128

    # One-time weight fold: (S*C_out, cig, K) -> block-diagonal
    # (nf, FB*cog, FB*K*cig), column order (conv-in-bundle, tap, ci).
    blocks = w.reshape(S, groups, cog, cig, K).transpose(0, 1, 2, 4, 3)
    blocks = blocks.reshape(nf, FB, cog, K * cig)
    eye = jnp.eye(FB, dtype=w.dtype)
    w_fold = (blocks[:, :, :, None, :] * eye[None, :, None, :, None]
              ).reshape(nf, RB, CD)

    # Lane-dense input layout: (B, S, C_in, T) -> (NB, S*C_in, TB*T).
    x_flat = x.reshape(NB, TB, S * C_in, T).transpose(0, 2, 1, 3)
    x_flat = x_flat.reshape(NB, S * C_in, TB * T)

    kernel = functools.partial(
        _conv1d_static_kernel,
        K=K, stride=stride, padding=padding, dilation=dilation,
        T=T, Tseg=Tseg, TB=TB, FB=FB, cig=cig, lchunk=lchunk)

    scratch_shapes = [pltpu.VMEM((S * C_in, Lin_pad), x.dtype)]
    if K > 1:
        scratch_shapes.append(pltpu.VMEM((CD, Lout_pad), x.dtype))

    vmem_limit = int(max(32 << 20, min(est_bytes + (16 << 20), 96 << 20)))
    flops = 2 * B * S * C_out * cig * K * T_out
    bytes_accessed = (x.size + w_fold.size + B * S * C_out * T_out) * itemsize

    out_raw = pl.pallas_call(
        kernel,
        out_shape=jax.ShapeDtypeStruct((NB, S * C_out, Lout_pad), x.dtype),
        grid=(NB,),
        in_specs=[
            pl.BlockSpec((1, S * C_in, TB * T), lambda i: (i, 0, 0)),
            pl.BlockSpec((nf, RB, CD), lambda i: (0, 0, 0)),
        ],
        out_specs=pl.BlockSpec((1, S * C_out, Lout_pad), lambda i: (i, 0, 0)),
        scratch_shapes=scratch_shapes,
        compiler_params=pltpu.CompilerParams(
            dimension_semantics=("parallel",),
            vmem_limit_bytes=vmem_limit),
        cost_estimate=pl.CostEstimate(
            flops=flops, transcendentals=0, bytes_accessed=bytes_accessed),
    )(x_flat, w_fold)

    # Layout plumbing back to (B, n_src, C_out, T_out); dead tail lanes of each
    # per-sample segment (and the 128-pad) are dropped here.
    out = out_raw[:, :, :TB * Fseg].reshape(NB, S, C_out, TB, Fseg)
    out = out.transpose(0, 3, 1, 2, 4).reshape(B, S, C_out, Fseg)
    return out[:, :, :, :T_out]


def _reference_conv1d_static(x, w, *, stride, padding, dilation, groups, n_src):
    """Pure-JAX reference mirroring nn.Conv1d(groups=4*groups) on (B, 4C, T)."""
    B, S, C_in, T = x.shape
    x_flat = x.reshape(B, S * C_in, T)
    out = lax.conv_general_dilated(
        x_flat, w,
        window_strides=(stride,),
        padding=[(padding, padding)],
        rhs_dilation=(dilation,),
        feature_group_count=n_src * groups,
        dimension_numbers=("NCH", "OIH", "NCH"),
    )
    C_out = w.shape[0] // n_src
    return out.reshape(B, n_src, C_out, -1)


if __name__ == "__main__":
    # Module hyper-params (synthetic, deterministic, small)
    B, n_src = 2, 4
    in_channels, out_channels = 4, 8
    kernel_size, stride, padding, dilation, groups = 3, 1, 1, 1, 1
    T = 16

    key = jax.random.PRNGKey(0)
    kx, kw = jax.random.split(key)
    x = jax.random.normal(kx, (B, n_src, in_channels, T), dtype=jnp.float32)
    # nn.Conv1d(n_src*in, n_src*out, K, groups=4*groups) weight shape:
    #   (n_src*out_channels, in_channels // groups, kernel_size)
    w = jax.random.normal(
        kw, (n_src * out_channels, in_channels // groups, kernel_size),
        dtype=jnp.float32) * 0.1

    out = conv1d_static(
        x, w, stride=stride, padding=padding, dilation=dilation,
        groups=groups, n_src=n_src)
    out = jax.block_until_ready(out)

    ref = _reference_conv1d_static(
        x, w, stride=stride, padding=padding, dilation=dilation,
        groups=groups, n_src=n_src)

    assert out.shape == (B, n_src, out_channels, T), out.shape
    assert jnp.allclose(out, ref, atol=2e-5, rtol=2e-5), float(
        jnp.max(jnp.abs(out - ref)))

    print("KERNEL_OK")
</pallas_src>

<mosaic_0001>
module attributes {stable_mosaic.version = 11 : i64} {
  func.func @_conv1d_static_kernel(%arg0: i32, %arg1: memref<1x16x16xf32, #tpu.memory_space<vmem>>, %arg2: memref<1x32x48xf32, #tpu.memory_space<vmem>>, %arg3: memref<1x32x128xf32, #tpu.memory_space<vmem>>, %arg4: memref<16x256xf32, #tpu.memory_space<vmem>>, %arg5: memref<48x128xf32, #tpu.memory_space<vmem>>) attributes {dimension_semantics = [#tpu.dimension_semantics<parallel>], iteration_bounds = array<i64: 2>, scalar_prefetch = 0 : i64, scratch_operands = 2 : i64, tpu.core_type = #tpu.core_type<tc>, window_params = [{transform_indices = @transform_0, window_bounds = array<i64: 1, 16, 16>}, {pipeline_mode = #tpu.pipeline_mode<synchronous>, transform_indices = @transform_1, window_bounds = array<i64: 1, 32, 48>}, {transform_indices = @transform_2, window_bounds = array<i64: 1, 32, 128>}]} {
    %cst = arith.constant 0.000000e+00 : f32
    %0 = vector.broadcast %cst : f32 to vector<16x1xf32>
    %c0 = arith.constant 0 : index
    %c0_0 = arith.constant 0 : index
    %1 = vector.load %arg4[%c0, %c0_0] : memref<16x256xf32, #tpu.memory_space<vmem>>, vector<16x1xf32>
    tpu.vector_store %arg4[%c0, %c0_0], %0 {strides = array<i32>} : memref<16x256xf32, #tpu.memory_space<vmem>>, vector<16x1xf32>,
    %c0_1 = arith.constant 0 : index
    %c17 = arith.constant 17 : index
    %2 = vector.load %arg4[%c0_1, %c17] : memref<16x256xf32, #tpu.memory_space<vmem>>, vector<16x1xf32>
    tpu.vector_store %arg4[%c0_1, %c17], %0 {strides = array<i32>} : memref<16x256xf32, #tpu.memory_space<vmem>>, vector<16x1xf32>,
    %c0_2 = arith.constant 0 : index
    %c0_3 = arith.constant 0 : index
    %c0_4 = arith.constant 0 : index
    %3 = vector.load %arg1[%c0_2, %c0_3, %c0_4] : memref<1x16x16xf32, #tpu.memory_space<vmem>>, vector<1x16x16xf32>
    %4 = vector.shape_cast %3 : vector<1x16x16xf32> to vector<16x16xf32>
    %c0_5 = arith.constant 0 : index
    %c1 = arith.constant 1 : index
    %5 = vector.load %arg4[%c0_5, %c1] : memref<16x256xf32, #tpu.memory_space<vmem>>, vector<16x16xf32>
    tpu.vector_store %arg4[%c0_5, %c1], %4 {strides = array<i32>} : memref<16x256xf32, #tpu.memory_space<vmem>>, vector<16x16xf32>,
    %c0_6 = arith.constant 0 : index
    %c0_7 = arith.constant 0 : index
    %6 = vector.load %arg4[%c0_6, %c0_7] : memref<16x256xf32, #tpu.memory_space<vmem>>, vector<4x128xf32>
    %c0_8 = arith.constant 0 : index
    %c0_9 = arith.constant 0 : index
    %7 = vector.load %arg5[%c0_8, %c0_9] : memref<48x128xf32, #tpu.memory_space<vmem>>, vector<4x128xf32>
    tpu.vector_store %arg5[%c0_8, %c0_9], %6 {strides = array<i32>} : memref<48x128xf32, #tpu.memory_space<vmem>>, vector<4x128xf32>,
    %c0_10 = arith.constant 0 : index
    %c1_11 = arith.constant 1 : index
    %8 = vector.load %arg4[%c0_10, %c1_11] : memref<16x256xf32, #tpu.memory_space<vmem>>, vector<4x128xf32>
    %c4 = arith.constant 4 : index
    %c0_12 = arith.constant 0 : index
    %9 = vector.load %arg5[%c4, %c0_12] : memref<48x128xf32, #tpu.memory_space<vmem>>, vector<4x128xf32>
    tpu.vector_store %arg5[%c4, %c0_12], %8 {strides = array<i32>} : memref<48x128xf32, #tpu.memory_space<vmem>>, vector<4x128xf32>,
    %c0_13 = arith.constant 0 : index
    %c2 = arith.constant 2 : index
    %10 = vector.load %arg4[%c0_13, %c2] : memref<16x256xf32, #tpu.memory_space<vmem>>, vector<4x128xf32>
    %c8 = arith.constant 8 : index
    %c0_14 = arith.constant 0 : index
    %11 = vector.load %arg5[%c8, %c0_14] : memref<48x128xf32, #tpu.memory_space<vmem>>, vector<4x128xf32>
    tpu.vector_store %arg5[%c8, %c0_14], %10 {strides = array<i32>} : memref<48x128xf32, #tpu.memory_space<vmem>>, vector<4x128xf32>,
    %c4_15 = arith.constant 4 : index
    %c0_16 = arith.constant 0 : index
    %12 = vector.load %arg4[%c4_15, %c0_16] : memref<16x256xf32, #tpu.memory_space<vmem>>, vector<4x128xf32>
    %c12 = arith.constant 12 : index
    %c0_17 = arith.constant 0 : index
    %13 = vector.load %arg5[%c12, %c0_17] : memref<48x128xf32, #tpu.memory_space<vmem>>, vector<4x128xf32>
    tpu.vector_store %arg5[%c12, %c0_17], %12 {strides = array<i32>} : memref<48x128xf32, #tpu.memory_space<vmem>>, vector<4x128xf32>,
    %c4_18 = arith.constant 4 : index
    %c1_19 = arith.constant 1 : index
    %14 = vector.load %arg4[%c4_18, %c1_19] : memref<16x256xf32, #tpu.memory_space<vmem>>, vector<4x128xf32>
    %c16 = arith.constant 16 : index
    %c0_20 = arith.constant 0 : index
    %15 = vector.load %arg5[%c16, %c0_20] : memref<48x128xf32, #tpu.memory_space<vmem>>, vector<4x128xf32>
    tpu.vector_store %arg5[%c16, %c0_20], %14 {strides = array<i32>} : memref<48x128xf32, #tpu.memory_space<vmem>>, vector<4x128xf32>,
    %c4_21 = arith.constant 4 : index
    %c2_22 = arith.constant 2 : index
    %16 = vector.load %arg4[%c4_21, %c2_22] : memref<16x256xf32, #tpu.memory_space<vmem>>, vector<4x128xf32>
    %c20 = arith.constant 20 : index
    %c0_23 = arith.constant 0 : index
    %17 = vector.load %arg5[%c20, %c0_23] : memref<48x128xf32, #tpu.memory_space<vmem>>, vector<4x128xf32>
    tpu.vector_store %arg5[%c20, %c0_23], %16 {strides = array<i32>} : memref<48x128xf32, #tpu.memory_space<vmem>>, vector<4x128xf32>,
    %c8_24 = arith.constant 8 : index
    %c0_25 = arith.constant 0 : index
    %18 = vector.load %arg4[%c8_24, %c0_25] : memref<16x256xf32, #tpu.memory_space<vmem>>, vector<4x128xf32>
    %c24 = arith.constant 24 : index
    %c0_26 = arith.constant 0 : index
    %19 = vector.load %arg5[%c24, %c0_26] : memref<48x128xf32, #tpu.memory_space<vmem>>, vector<4x128xf32>
    tpu.vector_store %arg5[%c24, %c0_26], %18 {strides = array<i32>} : memref<48x128xf32, #tpu.memory_space<vmem>>, vector<4x128xf32>,
    %c8_27 = arith.constant 8 : index
    %c1_28 = arith.constant 1 : index
    %20 = vector.load %arg4[%c8_27, %c1_28] : memref<16x256xf32, #tpu.memory_space<vmem>>, vector<4x128xf32>
    %c28 = arith.constant 28 : index
    %c0_29 = arith.constant 0 : index
    %21 = vector.load %arg5[%c28, %c0_29] : memref<48x128xf32, #tpu.memory_space<vmem>>, vector<4x128xf32>
    tpu.vector_store %arg5[%c28, %c0_29], %20 {strides = array<i32>} : memref<48x128xf32, #tpu.memory_space<vmem>>, vector<4x128xf32>,
    %c8_30 = arith.constant 8 : index
    %c2_31 = arith.constant 2 : index
    %22 = vector.load %arg4[%c8_30, %c2_31] : memref<16x256xf32, #tpu.memory_space<vmem>>, vector<4x128xf32>
    %c32 = arith.constant 32 : index
    %c0_32 = arith.constant 0 : index
    %23 = vector.load %arg5[%c32, %c0_32] : memref<48x128xf32, #tpu.memory_space<vmem>>, vector<4x128xf32>
    tpu.vector_store %arg5[%c32, %c0_32], %22 {strides = array<i32>} : memref<48x128xf32, #tpu.memory_space<vmem>>, vector<4x128xf32>,
    %c12_33 = arith.constant 12 : index
    %c0_34 = arith.constant 0 : index
    %24 = vector.load %arg4[%c12_33, %c0_34] : memref<16x256xf32, #tpu.memory_space<vmem>>, vector<4x128xf32>
    %c36 = arith.constant 36 : index
    %c0_35 = arith.constant 0 : index
    %25 = vector.load %arg5[%c36, %c0_35] : memref<48x128xf32, #tpu.memory_space<vmem>>, vector<4x128xf32>
    tpu.vector_store %arg5[%c36, %c0_35], %24 {strides = array<i32>} : memref<48x128xf32, #tpu.memory_space<vmem>>, vector<4x128xf32>,
    %c12_36 = arith.constant 12 : index
    %c1_37 = arith.constant 1 : index
    %26 = vector.load %arg4[%c12_36, %c1_37] : memref<16x256xf32, #tpu.memory_space<vmem>>, vector<4x128xf32>
    %c40 = arith.constant 40 : index
    %c0_38 = arith.constant 0 : index
    %27 = vector.load %arg5[%c40, %c0_38] : memref<48x128xf32, #tpu.memory_space<vmem>>, vector<4x128xf32>
    tpu.vector_store %arg5[%c40, %c0_38], %26 {strides = array<i32>} : memref<48x128xf32, #tpu.memory_space<vmem>>, vector<4x128xf32>,
    %c12_39 = arith.constant 12 : index
    %c2_40 = arith.constant 2 : index
    %28 = vector.load %arg4[%c12_39, %c2_40] : memref<16x256xf32, #tpu.memory_space<vmem>>, vector<4x128xf32>
    %c44 = arith.constant 44 : index
    %c0_41 = arith.constant 0 : index
    %29 = vector.load %arg5[%c44, %c0_41] : memref<48x128xf32, #tpu.memory_space<vmem>>, vector<4x128xf32>
    tpu.vector_store %arg5[%c44, %c0_41], %28 {strides = array<i32>} : memref<48x128xf32, #tpu.memory_space<vmem>>, vector<4x128xf32>,
    %c0_42 = arith.constant 0 : index
    %c0_43 = arith.constant 0 : index
    %c0_44 = arith.constant 0 : index
    %30 = vector.load %arg2[%c0_42, %c0_43, %c0_44] : memref<1x32x48xf32, #tpu.memory_space<vmem>>, vector<1x32x48xf32>
    %31 = vector.shape_cast %30 : vector<1x32x48xf32> to vector<32x48xf32>
    %c0_45 = arith.constant 0 : index
    %c0_46 = arith.constant 0 : index
    %32 = vector.load %arg5[%c0_45, %c0_46] : memref<48x128xf32, #tpu.memory_space<vmem>>, vector<48x128xf32>
    %cst_47 = arith.constant dense<0.000000e+00> : vector<32x128xf32>
    %33 = tpu.matmul %31, %32, %cst_47 {dimension_numbers = #tpu.dot_dimension_numbers<[1], [0], [0], [1], [0, 0, 1, 1], [], []>} : vector<32x48xf32>, vector<48x128xf32>, vector<32x128xf32> -> vector<32x128xf32>
    %c0_48 = arith.constant 0 : index
    %c0_49 = arith.constant 0 : index
    %c0_50 = arith.constant 0 : index
    %34 = vector.load %arg3[%c0_48, %c0_49, %c0_50] : memref<1x32x128xf32, #tpu.memory_space<vmem>>, vector<1x32x128xf32>
    %35 = vector.shape_cast %34 : vector<1x32x128xf32> to vector<32x128xf32>
    %36 = vector.shape_cast %33 : vector<32x128xf32> to vector<1x32x128xf32>
    tpu.vector_store %arg3[%c0_48, %c0_49, %c0_50], %36 {strides = array<i32>} : memref<1x32x128xf32, #tpu.memory_space<vmem>>, vector<1x32x128xf32>,
    return
  }
  func.func @transform_0(%arg0: i32) -> (i32, i32, i32) {
    %c0_i32 = arith.constant 0 : i32
    %c0_i32_0 = arith.constant 0 : i32
    %c0_i32_1 = arith.constant 0 : i32
    return %arg0, %c0_i32, %c0_i32_0 : i32, i32, i32
  }
  func.func @transform_1(%arg0: i32) -> (i32, i32, i32) {
    %c0_i32 = arith.constant 0 : i32
    %c0_i32_0 = arith.constant 0 : i32
    %c0_i32_1 = arith.constant 0 : i32
    %c0_i32_2 = arith.constant 0 : i32
    return %c0_i32, %c0_i32_0, %c0_i32_1 : i32, i32, i32
  }
  func.func @transform_2(%arg0: i32) -> (i32, i32, i32) {
    %c0_i32 = arith.constant 0 : i32
    %c0_i32_0 = arith.constant 0 : i32
    %c0_i32_1 = arith.constant 0 : i32
    return %arg0, %c0_i32, %c0_i32_0 : i32, i32, i32
  }
}

</mosaic_0001>

<bundles_post_ra>
// kernel: tpu_custom_call.1
= control target key start
LH: loop header
LB: loop body
LE: loop exit
PB: predicated region body
PF: predicated region fallthrough
CT: control target
= control target key end

     0   :  { %7 = vsyncpa [#allocation5], 0  ;;  %s883_s0 = inlined_call_operand.hbm [shape: f32[2,16,16], index: 0, kind: input, shape index: {}]   ;;  %s884_s1 = inlined_call_operand.hbm [shape: f32[1,32,48], index: 1, kind: input, shape index: {}]   ;;  %s885_s2 = inlined_call_operand.hbm [shape: f32[2,32,128], index: 2, kind: output, shape index: {}]  }
   0x1   :  { %9 = vsyncpa [#allocation5 + $0x1], 0 }
   0x2   :  { %10 = vsyncpa [#allocation8], 0 }
   0x3   :  { %11 = vsyncpa [#allocation6], 0 }
   0x4   :  { %13 = vsyncpa [#allocation6 + $0x1], 0  ;;  %s714_s9 = smov 0   ;;  %s716_s10 = smov 0  }
   0x5   :  { %s718_s11 = smov 0   ;;  %s720_s12 = smov 0  }
   0x6 LB: > { %s735_s13 = sadd.s32 4294967295, %s688_s12   ;;  %s453_s14 = sadd.s32 4294967294, %s688_s12   ;;  %s688_s12 = sphi %s720_s12, %s895_s12   ;;  %s684_s11 = sphi %s718_s11, %s894_s11   ;;  %s680_s10 = sphi %s716_s10, %s893_s10   ;;  %s676_s9 = sphi %s714_s9, %s892_s9  }
   0x7   : > { %p39_p0 = scmp.ne.s32.totalorder %s680_s10, %s676_s9  ;;  %p40_p1 = scmp.eq.s32.totalorder %s735_s13, 0 }
   0x8   : > { %p84_p2 = scmp.eq.s32.totalorder %s735_s13, 1  ;;  %p90_p3 = scmp.eq.s32.totalorder %s453_s14, 1 }
   0x9   : > { %p744_p4 = por %p40_p1, %p39_p0  ;;  %p454_p5 = scmp.ge.s32.totalorder %s688_s12, 1 }
   0xa   : > { %p749_p6 = por %p90_p3, %p39_p0  ;;  %p97_p7 = scmp.lt.s32.totalorder %s688_s12, 3 }
   0xb   : > { %s108_s19 = sshll.u32 %s884_s1, 4  ;;  %s690_s21 = smov [#allocation7]   ;;  %s109_s19 = int_to_ptr.hbm [resolvable:$true] %s108_s19 }
   0xc   : > { %p757_p8 = pnand %p454_p5, %p97_p7  ;;  %s110_s22 = sshll.u32 %s690_s21, 4  ;;  %s111_s22 = int_to_ptr.vmem [resolvable:$true] %s110_s22 }
   0xd   : > { %s767_s23 = sadd.s32 1, %s688_s12   ;;  %s691_s24 = smov 128  }
   0xe   : > { %p501_p9 = pneg %p757_p8  ;;  %s692_s25 = smov 8  }
   0xf   : > { %s23_s26 = ssub.s32 %s688_s12, %s767_s23  ;;  %s26_s27 = sadd.s32 1, %s684_s11 }
  0x10   : > { %p502_p10 = pnand %p501_p9, %p40_p1  ;;  %p24_p12 = scmp.eq.s32.totalorder %s23_s26, 0 }
  0x11   : > { %p33_p13 = scmp.ne.s32.totalorder %s684_s11, %s680_s10  ;;  %p34_p0 = scmp.eq.s32.totalorder %s688_s12, 0 }
  0x12   : > { %504 = dma.hbm_to_vmem [thread:$0]  (!%p502_p10), %s109_s19, 512, %s111_s22, [#allocation8], %s691_s24, %s691_s24, %s692_s25  }
  0x13   : > { %s779_s28 = scalar_select %p24_p12, %s684_s11, %s26_s27  }
  0x14   : > { %p783_p3 = por %p84_p2, %p33_p13  ;;  %p514_p5 = scmp.lt.s32.totalorder %s688_s12, 2 }
  0x15   : > { %s124_s30 = sand.u32 1, %s684_s11   ;;  %s473_s3 = sshll.u32 %s688_s12, 4 }
  0x16   : > { %p35_p7 = por %p34_p0, %p33_p13  ;;  %s457_s4 = sshll.u32 %s124_s30, 4 }
  0x17   : > { %s133_s7 = scalar_lea.hbm %s883_s0, %s473_s3  ;;  %s128_s14 = scalar_lea.vmem [#allocation4], %s457_s4 }
  0x18   : > { %s134_s8 = sshll.u32 %s133_s7, 4  ;;  %s136_s17 = sshll.u32 %s128_s14, 4  ;;  %s135_s8 = int_to_ptr.hbm [resolvable:$true] %s134_s8  ;;  %s137_s17 = int_to_ptr.vmem [resolvable:$true] %s136_s17 }
  0x19   : > { %p793_p9 = pnand %p514_p5, %p35_p7  ;;  %s125_s19 = scalar_lea.sflag [#allocation5], %s124_s30 }
  0x1a   : > { %s588_s21 = sshra.s32 %s135_s8, 4  ;;  %s595_s3 = scalar_lea.hbm %s883_s0, 32  ;;  %s589_s21 = int_to_ptr.hbm [resolvable:$true] %s588_s21 }
  0x1b   : > { %s590_s22 = scalar_lea.hbm %s589_s21, 16  ;;  %p592_p10 = pneg %p793_p9 }
  0x1c   : > { %p591_p2 = scmp.ne.s32.totalorder %s589_s21, %s590_s22  ;;  %p596_p0 = scmp.lt.s32.totalorder %s589_s21, %s883_s0 }
  0x1d   : > { %p597_p5 = scmp.lt.s32.totalorder %s595_s3, %s590_s22 }
  0x1e   : > { %p593_p12 = pnand %p592_p10, %p591_p2 }
  0x1f   : > { %p598_p7 = por %p597_p5, %p596_p0 }
  0x20   : > { %p594_p13 = pneg %p593_p12 }
  0x22   : > { %p599_p11 = pnand %p598_p7, %p594_p13 }
  0x24   : > { %602 = shalt.err (!%p599_p11)
}
  0x25   : > { %508 = dma.hbm_to_vmem [thread:$0]  (!%p793_p9), %s135_s8, 256, %s137_s17, %s125_s19, %s691_s24, %s691_s24, %s692_s25  }
  0x26   : > { %148 = sbr.rel (%p757_p8) target bundleno = 455 (0x1c7), region = 28  ;;  %s813_s30 = sand.u32 (!%p757_p8), 1, %s680_s10  }
  0x27   : > { %s461_s6 = sshll.u32 (!%p757_p8), %s813_s30, 4  ;;  %s151_s7 = scalar_lea.sflag (!%p757_p8), [#allocation5], %s813_s30 }
  0x28   : > { %s154_s14 = scalar_lea.vmem (!%p757_p8), [#allocation4], %s461_s6 }
  0x2b   : > { %663 = dma.done.wait (%p744_p4), %s151_s7, 256  }
  0x2c   : > { %665 = vsyncadd (%p744_p4), %s151_s7, 4294967040 }
  0x2d   : > { %667 = dma.done.wait (%p40_p1), [#allocation8], 512  }
  0x2e   : > { %669 = vsyncadd (%p40_p1), [#allocation8], 4294966784  ;;  %vm181_vm0 = vcmask 7168   ;;  %vm184_vm1 = vcmask 146568   ;;  %v693_v0 = vmov 0.0   ;;  %v188_v1 = vld [vmem:[%s154_s14 + $0x8] sm:$0xff] }
  0x2f   : > { %183 = vst.msk [vmem:[#allocation2 + $0x10] sm:$0xff] %vm181_vm0, %v693_v0  ;;  %v277_v2 = vld [vmem:[#allocation2 + $0x18] sm:$0xf0]  ;;  %s694_s20 = smov 1   ;;  %s695_s24 = smov 127   ;;  %v187_v4 = vld [vmem:[%s154_s14] sm:$0xff] }
  0x30   : > { %186 = vst.msk [vmem:[#allocation2 + $0x10] sm:$0xff] %vm184_vm1, %v693_v0  ;;  %193 = vrot.lane.b32.xlu0 %v188_v1, %s694_s20  ;;  %282 = vrot.lane.b32.xlu1 %v277_v2, %s695_s24  ;;  %v288_v3 = vld [vmem:[#allocation2 + $0x18] sm:$0xf0]  ;;  %s696_s15 = smov 126   ;;  %v264_v5 = vld [vmem:[#allocation2 + $0x18] sm:$0xf] }
  0x31   : > { %182 = vst.msk [vmem:[#allocation2] sm:$0xff] %vm181_vm0, %v693_v0  ;;  %293 = vrot.lane.b32.xlu2 %v288_v3, %s696_s15  ;;  %v253_v6 = vld [vmem:[#allocation2 + $0x18] sm:$0xf]  ;;  %v240_v7 = vld [vmem:[#allocation2 + $0x8] sm:$0xf0]  ;;  %vm197_vm2 = vcmask 138248  }
  0x32   : > { %185 = vst.msk [vmem:[#allocation2] sm:$0xff] %vm184_vm1, %v693_v0  ;;  %v229_v8 = vld [vmem:[#allocation2 + $0x8] sm:$0xf0]  ;;  %v215_v21 = vld [vmem:[#allocation2 + $0x8] sm:$0xf]  ;;  %vm222_vm3 = vcmask 1031168  }
  0x33   : > { %v203_v24 = vld [vmem:[#allocation2 + $0x8] sm:$0xf]  ;;  %vm210_vm4 = vcmask 1039360   ;;  %v300_v55 = vld [vmem:[#allocation7 + $0x10] sm:$0xff]  ;;  %vm308_vm5 = vcmask 392192   ;;  %v298_v57 = vld [vmem:[#allocation7] sm:$0xff] }
  0x34   : > { %v301_v56 = vld [vmem:[#allocation7 + $0x18] sm:$0xff]  ;;  %v299_v58 = vld [vmem:[#allocation7 + $0x8] sm:$0xff]  ;;  %s463_s25 = sshll.u32 %s813_s30, 5  ;;  %s474_s8 = sshll.u32 %s735_s13, 5 }
  0x35   : > { %s366_s19 = scalar_lea.hbm %s885_s2, %s474_s8  ;;  %s180_s21 = scalar_lea.vmem [#allocation9], %s463_s25 }
  0x36   : > { %s367_s22 = sshll.u32 %s180_s21, 4  ;;  %s369_s26 = sshll.u32 %s366_s19, 4  ;;  %s368_s22 = int_to_ptr.vmem [resolvable:$true] %s367_s22  ;;  %s370_s26 = int_to_ptr.hbm [resolvable:$true] %s369_s26 }
  0x37   : > { %s355_s27 = scalar_lea.sflag [#allocation6], %s813_s30  ;;  %s632_s13 = sshra.s32 %s370_s26, 4  ;;  %s633_s13 = int_to_ptr.hbm [resolvable:$true] %s632_s13 }
  0x38   : > { %191 = vrot.lane.b32.xlu0 %v187_v4, %s694_s20  ;;  %269 = vrot.lane.b32.xlu1 %v264_v5, %s696_s15  ;;  %s634_s3 = scalar_lea.hbm %s633_s13, 32  ;;  %s638_s6 = scalar_lea.hbm %s885_s2, 64 }
  0x39   : > { %234 = vrot.lane.b32.xlu2 %v229_v8, %s695_s24  ;;  %p635_p1 = scmp.ne.s32.totalorder %s633_s13, %s634_s3  ;;  %p639_p11 = scmp.lt.s32.totalorder %s633_s13, %s885_s2 }
  0x3a   : > { %p640_p9 = scmp.lt.s32.totalorder %s638_s6, %s634_s3 }
  0x3b   : > { %p636_p4 = pnand %p635_p1, %p783_p3 }
  0x3c   : > { %p641_p2 = por %p640_p9, %p639_p11 }
  0x3d   : > { %p637_p8 = pneg %p636_p4 }
  0x3f   : > { %p642_p10 = pnand %p641_p2, %p637_p8 }
  0x40   : > { %258 = vrot.lane.b32.xlu0 %v253_v6, %s695_s24  ;;  %245 = vrot.lane.b32.xlu1 %v240_v7, %s696_s15 }
  0x8b   : > { %v294_v25 = vpop.permute.xlu2 %293 }
  0x93   : > { %v235_v26 = vpop.permute.xlu2 %234 }
  0xa2   : > { %v194_v9 = vpop.permute.xlu0 %193  ;;  %v283_v27 = vpop.permute.xlu1 %282 }
  0xa3   : > { %199 = vst.msk [vmem:[#allocation2 + $0x10] sm:$0xff] %vm197_vm2, %v194_v9 }
  0xaa   : > { %v250_v10 = vld [vmem:[#allocation2 + $0x10] sm:$0xf]  ;;  %v274_v11 = vld [vmem:[#allocation2 + $0x10] sm:$0xf0]  ;;  %v192_v12 = vpop.permute.xlu0 %191  ;;  %v270_v30 = vpop.permute.xlu1 %269 }
  0xab   : > { %v287_v13 = vld [vmem:[#allocation2 + $0x10] sm:$0xf0]  ;;  %251 = vst [vmem:[#allocation3 + $0x18] sm:$0xf] %v250_v10  ;;  %v263_v15 = vld [vmem:[#allocation2 + $0x10] sm:$0xf] }
  0xac   : > { %291 = vrot.lane.b32.xlu2 %v287_v13, %s696_s15  ;;  %v276_v14 = vld [vmem:[#allocation2 + $0x10] sm:$0xf0]  ;;  %275 = vst [vmem:[#allocation3 + $0x20] sm:$0xf0] %v274_v11  ;;  %267 = vrot.lane.b32.xlu0 %v263_v15, %s696_s15  ;;  %v252_v16 = vld [vmem:[#allocation2 + $0x10] sm:$0xf] }
  0xad   : > { %280 = vrot.lane.b32.xlu1 %v276_v14, %s695_s24  ;;  %198 = vst.msk [vmem:[#allocation2] sm:$0xff] %vm197_vm2, %v192_v12 }
  0xb2   : > { %v259_v31 = vpop.permute.xlu0 %258  ;;  %v246_v34 = vpop.permute.xlu1 %245 }
  0xb4   : > { %256 = vrot.lane.b32.xlu2 %v252_v16, %s695_s24  ;;  %v200_v17 = vld [vmem:[#allocation2] sm:$0xf]  ;;  %v226_v18 = vld [vmem:[#allocation2] sm:$0xf0] }
  0xb5   : > { %v239_v19 = vld [vmem:[#allocation2] sm:$0xf0]  ;;  %201 = vst [vmem:[#allocation3] sm:$0xf] %v200_v17  ;;  %v214_v22 = vld [vmem:[#allocation2] sm:$0xf] }
  0xb6   : > { %243 = vrot.lane.b32.xlu0 %v239_v19, %s696_s15  ;;  %v228_v20 = vld [vmem:[#allocation2] sm:$0xf0]  ;;  %227 = vst [vmem:[#allocation3 + $0x8] sm:$0xf0] %v226_v18  ;;  %v202_v23 = vld [vmem:[#allocation2] sm:$0xf] }
  0xb7   : > { %232 = vrot.lane.b32.xlu1 %v228_v20, %s695_s24 }
  0xbc   : > { %218 = vrot.lane.b32.xlu2 %v214_v22, %s696_s15 }
  0xbe   : > { %220 = vrot.lane.b32.xlu0 %v215_v21, %s696_s15 }
  0xbf   : > { %206 = vrot.lane.b32.xlu1 %v202_v23, %s695_s24 }
  0xc4   : > { %208 = vrot.lane.b32.xlu2 %v203_v24, %s695_s24 }
 0x106   : > { %v292_v28 = vpop.permute.xlu2 %291 }
 0x107   : > { %v295_v29 = vsel %vm222_vm3, %v292_v28, %v294_v25 }
 0x108   : > { %297 = vst [vmem:[#allocation3 + $0x28] sm:$0xf0] %v295_v29 }
 0x10e   : > { %v257_v32 = vpop.permute.xlu2 %256 }
 0x10f   : > { %v260_v33 = vsel %vm210_vm4, %v257_v32, %v259_v31 }
 0x110   : > { %262 = vst [vmem:[#allocation3 + $0x1c] sm:$0xf] %v260_v33 }
 0x116   : > { %v219_v39 = vpop.permute.xlu2 %218 }
 0x117   : > { %v305_v46 = vld [vmem:[#allocation3 + $0x18] sm:$0xff] }
 0x11e   : > { %v268_v36 = vpop.permute.xlu0 %267  ;;  %v209_v47 = vpop.permute.xlu2 %208 }
 0x11f   : > { %v281_v35 = vpop.permute.xlu1 %280  ;;  %v271_v38 = vsel %vm222_vm3, %v268_v36, %v270_v30 }
 0x120   : > { %v284_v37 = vsel %vm210_vm4, %v281_v35, %v283_v27  ;;  %273 = vst [vmem:[#allocation3 + $0x20] sm:$0xf] %v271_v38 }
 0x121   : > { %286 = vst [vmem:[#allocation3 + $0x24] sm:$0xf0] %v284_v37 }
 0x127   : > { %v306_v45 = vld [vmem:[#allocation3 + $0x20] sm:$0xff] }
 0x128   : > { %v244_v40 = vpop.permute.xlu0 %243  ;;  %v307_v41 = vld [vmem:[#allocation3 + $0x28] sm:$0xff] }
 0x129   : > { %v247_v42 = vsel %vm222_vm3, %v244_v40, %v246_v34  ;;  %v233_v43 = vpop.permute.xlu1 %232  ;;  %331 = vmatpush.msra.mxu0 %v307_v41  ;;  %475 = vmatpush.msra.mxu1 %v307_v41 }
 0x12a   : > { %249 = vst [vmem:[#allocation3 + $0x10] sm:$0xf0] %v247_v42  ;;  %v236_v44 = vsel %vm210_vm4, %v233_v43, %v235_v26  ;;  %476 = vmatpush.msra.mxu2 %v307_v41  ;;  %477 = vmatpush.msra.mxu3 %v307_v41 }
 0x12b   : > { %238 = vst [vmem:[#allocation3 + $0xc] sm:$0xf0] %v236_v44  ;;  %332 = vmatpush.msra.mxu0 %v306_v45  ;;  %478 = vmatpush.msra.mxu1 %v306_v45 }
 0x12c   : > { %479 = vmatpush.msra.mxu2 %v306_v45  ;;  %480 = vmatpush.msra.mxu3 %v306_v45 }
 0x12d   : > { %333 = vmatpush.msra.mxu0 %v305_v46  ;;  %481 = vmatpush.msra.mxu1 %v305_v46 }
 0x12e   : > { %482 = vmatpush.msra.mxu2 %v305_v46  ;;  %483 = vmatpush.msra.mxu3 %v305_v46 }
 0x130   : > { %v221_v48 = vpop.permute.xlu0 %220 }
 0x131   : > { %v223_v49 = vsel %vm222_vm3, %v219_v39, %v221_v48  ;;  %v207_v50 = vpop.permute.xlu1 %206 }
 0x132   : > { %225 = vst [vmem:[#allocation3 + $0x8] sm:$0xf] %v223_v49  ;;  %v211_v51 = vsel %vm210_vm4, %v207_v50, %v209_v47  ;;  %v304_v52 = vld [vmem:[#allocation3 + $0x10] sm:$0xff] }
 0x133   : > { %213 = vst [vmem:[#allocation3 + $0x4] sm:$0xf] %v211_v51  ;;  %334 = vmatpush.msra.mxu0 %v304_v52  ;;  %484 = vmatpush.msra.mxu1 %v304_v52 }
 0x134   : > { %485 = vmatpush.msra.mxu2 %v304_v52  ;;  %486 = vmatpush.msra.mxu3 %v304_v52 }
 0x139   : > { %v303_v53 = vld [vmem:[#allocation3 + $0x8] sm:$0xff] }
 0x13a   : > { %335 = vmatpush.msra.mxu0 %v303_v53  ;;  %487 = vmatpush.msra.mxu1 %v303_v53  ;;  %v302_v54 = vld [vmem:[#allocation3] sm:$0xff] }
 0x13b   : > { %488 = vmatpush.msra.mxu2 %v303_v53  ;;  %489 = vmatpush.msra.mxu3 %v303_v53 }
 0x13c   : > { %336 = vmatpush.msra.mxu0 %v302_v54  ;;  %490 = vmatpush.msra.mxu1 %v302_v54 }
 0x13d   : > { %491 = vmatpush.msra.mxu2 %v302_v54  ;;  %492 = vmatpush.msra.mxu3 %v302_v54 }
 0x13e   : > { %466 = vmatmul.msk.f32.vlgmr.msra.gmra.mxu2 %vm308_vm5, %v300_v55  ;;  %467 = vmatmul.msk.f32.vlgmr.msra.gmra.mxu3 %vm308_vm5, %v301_v56 }
 0x13f   : > { %464 = vmatmul.msk.f32.vlgmr.msra.gmra.mxu0 %vm308_vm5, %v298_v57  ;;  %465 = vmatmul.msk.f32.vlgmr.msra.gmra.mxu1 %vm308_vm5, %v299_v58 }
 0x1bc   : > { %v338_v59 = vpop.f32.mrf.mxu0  ;;  %v341_v60 = vpop.f32.mrf.mxu1 }
 0x1bd   : > { %350 = vst [vmem:[%s180_s21] sm:$0xff] %v338_v59 }
 0x1be   : > { %351 = vst [vmem:[%s180_s21 + $0x8] sm:$0xff] %v341_v60 }
 0x1c1   : > { %v344_v61 = vpop.f32.mrf.mxu2  ;;  %v347_v62 = vpop.f32.mrf.mxu3 }
 0x1c2   : > { %352 = vst [vmem:[%s180_s21 + $0x10] sm:$0xff] %v344_v61 }
 0x1c3   : > { %353 = vst [vmem:[%s180_s21 + $0x18] sm:$0xff] %v347_v62 }
 0x1c4   : > { %645 = shalt.err (!%p642_p10)
}
 0x1c5   : > { %s697_s30 = smov 128   ;;  %s698_s20 = smov 8  }
 0x1c6   : > { %499 = dma.vmem_to_hbm [thread:$0]  (%p783_p3), %s368_s22, 512, %s370_s26, %s355_s27, %s697_s30, %s697_s30, %s698_s20  }
 0x1c7 PF: > { %s384_s24 = sand.u32 1, %s676_s9   ;;  %p891_p12 = scmp.ge.s32.totalorder %s688_s12, 2 }
 0x1c8   : > { %s385_s15 = scalar_lea.sflag [#allocation6], %s384_s24 }
 0x1c9   : > { %p510_p13 = pnand %p891_p12, %p749_p6 }
 0x1cb   : > { %p511_p0 = pneg %p510_p13 }
 0x1cd   : > { %671 = dma.done.wait (%p511_p0), %s385_s15, 512  }
 0x1ce   : > { %673 = vsyncadd (%p511_p0), %s385_s15, 4294966784  ;;  %p16_p5 = scmp.ge.s32.totalorder %s767_s23, 4   ;;  %s892_s9 = smov %s680_s10 }
 0x1cf   : > { %s893_s10 = smov %s684_s11  ;;  %s894_s11 = smov %s779_s28 }
 0x1d0   : > { %s895_s12 = smov %s767_s23  ;;  %18 = sbr.rel (!%p16_p5) target bundleno = 6 (0x6), region = 77 }
 0x1d5   :  { %391 = vsyncpa [#allocation5], 1 }
 0x1d6   :  { %393 = vsyncpa [#allocation5 + $0x1], 1 }
 0x1d7   :  { %394 = vsyncpa [#allocation8], 1 }
 0x1d8   :  { %395 = vsyncpa [#allocation6], 1 }
 0x1d9   :  { %397 = vsyncpa [#allocation6 + $0x1], 1 }

</bundles_post_ra>
